<compile_context>
chip_gen: v5e
topology: v5e:2x2
jax: 0.10.0
libtpu: 0.0.40
codegen_flags: <defaults>
</compile_context>

<pallas_src>
import jax
import jax.numpy as jnp
from jax.experimental import pallas as pl
from jax.experimental.pallas import tpu as pltpu

KERNEL_SIZE = 3    # Conv1d kernel_size
POOL_SIZE = 8      # MaxPool1d kernel_size (stride defaults to kernel_size)
LANE = 128
MAX_BATCH_TILE = 512   # review: raise tile cap to 512-1024; per-step overhead dominates


def _cnn_kernel(xw_ref, wc_ref, bc_ref, wf_ref, bf_ref, o_ref):
    TB, W, KE = xw_ref.shape
    H = wc_ref.shape[1]

    # ---- Fused 3-tap Conv1d: one (TB*8, 3E) @ (3E, H) MXU matmul, f32 acc ----
    x2 = xw_ref[...].reshape(TB * W, KE)
    conv = jnp.dot(x2, wc_ref[...], preferred_element_type=jnp.float32)
    conv = conv.reshape(TB, W, H)

    # ---- MaxPool over the (already last) window; per-channel bias post-max ----
    pooled = jnp.max(conv, axis=1) + bc_ref[...]                       # (TB, H) f32

    # ---- Linear (lane-padded N) + Softmax(dim=1), all f32 epilogue ----
    logits = jnp.dot(pooled.astype(wf_ref.dtype), wf_ref[...],
                     preferred_element_type=jnp.float32) + bf_ref[...]
    m = jnp.max(logits, axis=1, keepdims=True)
    e = jnp.exp(logits - m)
    denom = jnp.sum(e, axis=1, keepdims=True)
    # exact reciprocal (EUP) + multiply; approx=True would break sum-to-1 tol
    o_ref[...] = (e * pl.reciprocal(denom, approx=False)).astype(o_ref.dtype)


def _round_up(x, m):
    return ((x + m - 1) // m) * m


def _vmem_capacity_bytes():
    """Generation-aware VMEM capacity (v5e/v6e: 128 MiB, v7x: 64 MiB per TC)."""
    try:
        info = pltpu.get_tpu_info()
        cap = getattr(info, "vmem_capacity_bytes", None)
        if cap:
            return int(cap)
    except Exception:
        pass
    return 64 << 20   # conservative default = v7x per-TensorCore physical VMEM


def _pick_batch_tile(B, KE, H, OP, out_itemsize):
    """Largest batch tile that (a) fits a conservative VMEM working-set budget,
    (b) is <= MAX_BATCH_TILE, (c) still yields >= 2 grid steps, (d) is a
    multiple of 8 (sublane layout)."""
    act_itemsize = 2  # bf16
    per_row = (3 * POOL_SIZE * KE * act_itemsize          # activation, up to 3 buffers
               + 2 * OP * out_itemsize)                   # output, double-buffered
    weights = KE * H * 2 + H * OP * 2 + (H + OP) * 4      # resident weights + biases
    budget = _vmem_capacity_bytes() // 2                  # headroom for compiler scratch
    tb_vmem = max(8, ((budget - weights) // max(per_row, 1)) // 8 * 8)
    tb_half = _round_up(max(1, -(-B // 2)), 8)            # ceil(B/2) -> >=2 grid steps
    tb = max(8, min(MAX_BATCH_TILE, tb_vmem, tb_half))
    needed = weights + tb * per_row
    return int(tb), int(needed)


def _act_block_spec(TB, KE, n_steps):
    idx = lambda i: (i, 0, 0)
    if n_steps > 2:
        # Extra pipeline depth only on the streamed activation input.
        try:
            return pl.BlockSpec((TB, POOL_SIZE, KE), idx, pipeline_mode=pl.Buffered(3))
        except Exception:
            pass
    return pl.BlockSpec((TB, POOL_SIZE, KE), idx)


def cnn_forward(x_ids, emb_w, conv_w, conv_b, fc_w, fc_b,
                *, compute_dtype=jnp.bfloat16, out_dtype=jnp.float32):
    """x_ids: (B, L) int32 token ids.

    Returns a lane/batch-PADDED (BP, OP) array of softmax probabilities where
    BP >= B (padded batch rows are junk) and OP = round_up(output_size, 128)
    (padded lanes are exactly 0).  Consumers should slice [:B, :output_size];
    keeping the slice out of this function avoids an extra HBM round trip.
    """
    B, L = x_ids.shape
    H, E, K = conv_w.shape
    assert K == KERNEL_SIZE
    O = fc_w.shape[0]

    Lc = L - (KERNEL_SIZE - 1)
    P = Lc // POOL_SIZE
    if P < 1:
        # PyTorch's MaxPool1d would error on a zero-size pooled output; mirror that.
        raise ValueError(
            f"seq_len={L} too short: conv_len={Lc} gives no complete pool window "
            f"of size {POOL_SIZE}.")

    # x[:, :, -1] after MaxPool1d(8) == max over the LAST COMPLETE window of 8
    # conv outputs, which depends only on input timesteps [start, start + 10).
    start = (P - 1) * POOL_SIZE
    win = POOL_SIZE + KERNEL_SIZE - 1                      # 10

    KE = KERNEL_SIZE * E
    OP = _round_up(O, LANE)
    out_itemsize = jnp.dtype(out_dtype).itemsize

    # Batch tile + padded batch (>= 2 grid steps, tile multiple of 8).
    TB, needed_bytes = _pick_batch_tile(B, KE, H, OP, out_itemsize)
    n_steps = max(2, pl.cdiv(B, TB))
    BP = n_steps * TB

    # ---- Tap-unfold on the token IDS, then ONE embedding gather ----
    # ids_win[b, p + k] feeds conv output position p, tap k.
    ids_win = x_ids[:, start:start + win]                          # (B, 10)
    if BP != B:
        ids_win = jnp.concatenate(
            [ids_win, jnp.zeros((BP - B, win), ids_win.dtype)], axis=0)
    ids_unf = jnp.stack([ids_win[:, k:k + POOL_SIZE]
                         for k in range(KERNEL_SIZE)], axis=-1)    # (BP, 8, 3)
    # padding_idx=0 honored as long as emb_w row 0 stays exactly zero.
    x_unf = jnp.take(emb_w, ids_unf, axis=0).astype(compute_dtype)  # (BP, 8, 3, E)
    xw = x_unf.reshape(BP, POOL_SIZE, KE)                           # contiguous reshape

    # Conv weight (H, E, K) -> tap-major (K*E, H), matching the unfold order.
    wc = jnp.transpose(conv_w, (2, 1, 0)).reshape(KE, H).astype(compute_dtype)
    bc = conv_b.reshape(1, H).astype(jnp.float32)

    # FC weight lane-padded to a multiple of 128: dense MXU columns + unmasked
    # stores.  Padded bias lanes get -1e30 so exp underflows to exactly 0.
    wf = jnp.zeros((H, OP), compute_dtype).at[:, :O].set(fc_w.T.astype(compute_dtype))
    bf = jnp.full((1, OP), -1e30, jnp.float32).at[:, :O].set(fc_b.astype(jnp.float32))

    compiler_kwargs = dict(
        dimension_semantics=("parallel",),   # v7x: shard batch tiles across both TCs
    )
    # Only RAISE the scoped VMEM limit when the working set might exceed the
    # generation default; never lower it.
    if needed_bytes > (12 << 20):
        cap = _vmem_capacity_bytes()
        compiler_kwargs["vmem_limit_bytes"] = int(
            min(cap * 9 // 10, max(2 * needed_bytes, 32 << 20)))

    out = pl.pallas_call(
        _cnn_kernel,
        out_shape=jax.ShapeDtypeStruct((BP, OP), out_dtype),
        grid=(BP // TB,),
        in_specs=[
            _act_block_spec(TB, KE, n_steps),                     # activations: batch-tiled
            pl.BlockSpec((KE, H), lambda i: (0, 0)),              # conv weight: VMEM-resident
            pl.BlockSpec((1, H), lambda i: (0, 0)),               # conv bias
            pl.BlockSpec((H, OP), lambda i: (0, 0)),              # fc weight (lane-padded)
            pl.BlockSpec((1, OP), lambda i: (0, 0)),              # fc bias (lane-padded)
        ],
        out_specs=pl.BlockSpec((TB, OP), lambda i: (i, 0)),
        compiler_params=pltpu.CompilerParams(**compiler_kwargs),
    )(xw, wc, bc, wf, bf)

    return out   # padded; caller slices [:B, :O]


def _reference(x_ids, emb_w, conv_w, conv_b, fc_w, fc_b):
    """Pure-JAX f32 replica of the PyTorch forward (for correctness check)."""
    x = jnp.take(emb_w, x_ids, axis=0)                      # (B, L, E)
    x = jnp.transpose(x, (0, 2, 1))                         # (B, E, L)
    B, E, L = x.shape
    H = conv_w.shape[0]
    Lc = L - KERNEL_SIZE + 1
    conv = jnp.zeros((B, H, Lc), jnp.float32)
    for k in range(KERNEL_SIZE):
        conv = conv + jnp.einsum('bel,he->bhl', x[:, :, k:k + Lc], conv_w[:, :, k])
    conv = conv + conv_b[None, :, None]
    P = Lc // POOL_SIZE
    pooled = conv[:, :, :P * POOL_SIZE].reshape(B, H, P, POOL_SIZE).max(axis=-1)
    feat = pooled[:, :, -1]                                 # (B, H)
    logits = feat @ fc_w.T + fc_b
    e = jnp.exp(logits - logits.max(axis=1, keepdims=True))
    return e / e.sum(axis=1, keepdims=True)


if __name__ == "__main__":
    # seq_len must give conv_len >= 8 so MaxPool1d(8) yields >= 1 window.
    vocab_size, emb_dim, hidden_size, output_size = 32, 16, 32, 8
    batch, seq_len = 2, 18   # conv_len = 16 -> 2 pooled windows -> take the last

    key = jax.random.PRNGKey(0)
    k1, k2, k3, k4, k5, k6 = jax.random.split(key, 6)

    emb_w = jax.random.normal(k1, (vocab_size, emb_dim), jnp.float32) * 0.1
    emb_w = emb_w.at[0].set(0.0)                                  # padding_idx=0
    conv_w = jax.random.normal(k2, (hidden_size, emb_dim, KERNEL_SIZE), jnp.float32) * 0.1
    conv_b = jax.random.normal(k3, (hidden_size,), jnp.float32) * 0.1
    fc_w = jax.random.normal(k4, (output_size, hidden_size), jnp.float32) * 0.1
    fc_b = jax.random.normal(k5, (output_size,), jnp.float32) * 0.1
    x_ids = jax.random.randint(k6, (batch, seq_len), 0, vocab_size, jnp.int32)

    padded = jax.block_until_ready(
        cnn_forward(x_ids, emb_w, conv_w, conv_b, fc_w, fc_b))
    out = padded[:batch, :output_size]    # slice padding once, at the consumer
    ref = _reference(x_ids, emb_w, conv_w, conv_b, fc_w, fc_b)

    assert out.shape == (batch, output_size)
    assert bool(jnp.all(jnp.isfinite(out)))
    assert bool(jnp.allclose(jnp.sum(out, axis=1), 1.0, atol=1e-5))
    assert bool(jnp.allclose(out, ref, atol=2e-2)), float(jnp.max(jnp.abs(out - ref)))
    print("KERNEL_OK")
</pallas_src>

<mosaic_0001>
module attributes {stable_mosaic.version = 11 : i64} {
  func.func @_cnn_kernel(%arg0: i32, %arg1: memref<8x8x48xbf16, #tpu.memory_space<vmem>>, %arg2: memref<48x32xbf16, #tpu.memory_space<vmem>>, %arg3: memref<1x32xf32, #tpu.memory_space<vmem>>, %arg4: memref<32x128xbf16, #tpu.memory_space<vmem>>, %arg5: memref<1x128xf32, #tpu.memory_space<vmem>>, %arg6: memref<8x128xf32, #tpu.memory_space<vmem>>) attributes {dimension_semantics = [#tpu.dimension_semantics<parallel>], iteration_bounds = array<i64: 2>, scalar_prefetch = 0 : i64, scratch_operands = 0 : i64, tpu.core_type = #tpu.core_type<tc>, window_params = [{transform_indices = @transform_0, window_bounds = array<i64: 8, 8, 48>}, {pipeline_mode = #tpu.pipeline_mode<synchronous>, transform_indices = @transform_1, window_bounds = array<i64: 48, 32>}, {pipeline_mode = #tpu.pipeline_mode<synchronous>, transform_indices = @transform_2, window_bounds = array<i64: 1, 32>}, {pipeline_mode = #tpu.pipeline_mode<synchronous>, transform_indices = @transform_3, window_bounds = array<i64: 32, 128>}, {pipeline_mode = #tpu.pipeline_mode<synchronous>, transform_indices = @transform_4, window_bounds = array<i64: 1, 128>}, {transform_indices = @transform_5, window_bounds = array<i64: 8, 128>}]} {
    %c0 = arith.constant 0 : index
    %c0_0 = arith.constant 0 : index
    %c0_1 = arith.constant 0 : index
    %0 = vector.load %arg1[%c0, %c0_0, %c0_1] : memref<8x8x48xbf16, #tpu.memory_space<vmem>>, vector<8x8x48xbf16>
    %1 = vector.shape_cast %0 : vector<8x8x48xbf16> to vector<64x48xbf16>
    %c0_2 = arith.constant 0 : index
    %c0_3 = arith.constant 0 : index
    %2 = vector.load %arg2[%c0_2, %c0_3] : memref<48x32xbf16, #tpu.memory_space<vmem>>, vector<48x32xbf16>
    %cst = arith.constant dense<0.000000e+00> : vector<64x32xf32>
    %3 = tpu.matmul %1, %2, %cst {dimension_numbers = #tpu.dot_dimension_numbers<[1], [0], [0], [1], [0, 0, 1, 1], [], []>} : vector<64x48xbf16>, vector<48x32xbf16>, vector<64x32xf32> -> vector<64x32xf32>
    %4 = vector.shape_cast %3 : vector<64x32xf32> to vector<8x8x32xf32>
    %cst_4 = arith.constant dense<0xFF800000> : vector<8x32xf32>
    %5 = vector.multi_reduction <maximumf>, %4, %cst_4 [1] : vector<8x8x32xf32> to vector<8x32xf32>
    %c0_5 = arith.constant 0 : index
    %c0_6 = arith.constant 0 : index
    %6 = vector.load %arg3[%c0_5, %c0_6] : memref<1x32xf32, #tpu.memory_space<vmem>>, vector<1x32xf32>
    %7 = vector.broadcast %6 : vector<1x32xf32> to vector<8x32xf32>
    %8 = arith.addf %5, %7 : vector<8x32xf32>
    %9 = arith.truncf %8 : vector<8x32xf32> to vector<8x32xbf16>
    %c0_7 = arith.constant 0 : index
    %c0_8 = arith.constant 0 : index
    %10 = vector.load %arg4[%c0_7, %c0_8] : memref<32x128xbf16, #tpu.memory_space<vmem>>, vector<32x128xbf16>
    %cst_9 = arith.constant dense<0.000000e+00> : vector<8x128xf32>
    %11 = tpu.matmul %9, %10, %cst_9 {dimension_numbers = #tpu.dot_dimension_numbers<[1], [0], [0], [1], [0, 0, 1, 1], [], []>} : vector<8x32xbf16>, vector<32x128xbf16>, vector<8x128xf32> -> vector<8x128xf32>
    %c0_10 = arith.constant 0 : index
    %c0_11 = arith.constant 0 : index
    %12 = vector.load %arg5[%c0_10, %c0_11] : memref<1x128xf32, #tpu.memory_space<vmem>>, vector<1x128xf32>
    %13 = vector.broadcast %12 : vector<1x128xf32> to vector<8x128xf32>
    %14 = arith.addf %11, %13 : vector<8x128xf32>
    %cst_12 = arith.constant dense<0xFF800000> : vector<8xf32>
    %15 = vector.multi_reduction <maximumf>, %14, %cst_12 [1] : vector<8x128xf32> to vector<8xf32>
    %16 = vector.shape_cast %15 : vector<8xf32> to vector<8x1xf32>
    %17 = vector.broadcast %16 : vector<8x1xf32> to vector<8x128xf32>
    %18 = arith.subf %14, %17 : vector<8x128xf32>
    %19 = math.exp %18 : vector<8x128xf32>
    %cst_13 = arith.constant dense<0.000000e+00> : vector<8xf32>
    %20 = vector.multi_reduction <add>, %19, %cst_13 [1] : vector<8x128xf32> to vector<8xf32>
    %21 = vector.shape_cast %20 : vector<8xf32> to vector<8x1xf32>
    %22 = tpu.reciprocal %21 : vector<8x1xf32> -> vector<8x1xf32>
    %23 = vector.broadcast %22 : vector<8x1xf32> to vector<8x128xf32>
    %24 = arith.mulf %19, %23 : vector<8x128xf32>
    %c0_14 = arith.constant 0 : index
    %c0_15 = arith.constant 0 : index
    %25 = vector.load %arg6[%c0_14, %c0_15] : memref<8x128xf32, #tpu.memory_space<vmem>>, vector<8x128xf32>
    tpu.vector_store %arg6[%c0_14, %c0_15], %24 {strides = array<i32>} : memref<8x128xf32, #tpu.memory_space<vmem>>, vector<8x128xf32>,
    return
  }
  func.func @transform_0(%arg0: i32) -> (i32, i32, i32) {
    %c0_i32 = arith.constant 0 : i32
    %c0_i32_0 = arith.constant 0 : i32
    %c0_i32_1 = arith.constant 0 : i32
    return %arg0, %c0_i32, %c0_i32_0 : i32, i32, i32
  }
  func.func @transform_1(%arg0: i32) -> (i32, i32) {
    %c0_i32 = arith.constant 0 : i32
    %c0_i32_0 = arith.constant 0 : i32
    %c0_i32_1 = arith.constant 0 : i32
    return %c0_i32, %c0_i32_0 : i32, i32
  }
  func.func @transform_2(%arg0: i32) -> (i32, i32) {
    %c0_i32 = arith.constant 0 : i32
    %c0_i32_0 = arith.constant 0 : i32
    %c0_i32_1 = arith.constant 0 : i32
    return %c0_i32, %c0_i32_0 : i32, i32
  }
  func.func @transform_3(%arg0: i32) -> (i32, i32) {
    %c0_i32 = arith.constant 0 : i32
    %c0_i32_0 = arith.constant 0 : i32
    %c0_i32_1 = arith.constant 0 : i32
    return %c0_i32, %c0_i32_0 : i32, i32
  }
  func.func @transform_4(%arg0: i32) -> (i32, i32) {
    %c0_i32 = arith.constant 0 : i32
    %c0_i32_0 = arith.constant 0 : i32
    %c0_i32_1 = arith.constant 0 : i32
    return %c0_i32, %c0_i32_0 : i32, i32
  }
  func.func @transform_5(%arg0: i32) -> (i32, i32) {
    %c0_i32 = arith.constant 0 : i32
    %c0_i32_0 = arith.constant 0 : i32
    return %arg0, %c0_i32 : i32, i32
  }
}

</mosaic_0001>

<bundles_post_ra>
// kernel: tpu_custom_call.1
= control target key start
LH: loop header
LB: loop body
LE: loop exit
PB: predicated region body
PF: predicated region fallthrough
CT: control target
= control target key end

     0   :  { %10 = vsyncpa [#allocation3], 0  ;;  %s1013_s0 = inlined_call_operand.hbm [shape: bf16[16,8,48], index: 0, kind: input, shape index: {}]   ;;  %s1014_s1 = inlined_call_operand.vmem [shape: bf16[48,32], index: 1, kind: input, shape index: {}]   ;;  %s1015_s2 = inlined_call_operand.vmem [shape: f32[1,32], index: 2, kind: input, shape index: {}]   ;;  %s1016_s3 = inlined_call_operand.vmem [shape: bf16[32,128], index: 3, kind: input, shape index: {}]   ;;  %s1017_s4 = inlined_call_operand.vmem [shape: f32[1,128], index: 4, kind: input, shape index: {}]   ;;  %s1018_s5 = inlined_call_operand.hbm [shape: f32[16,128], index: 5, kind: output, shape index: {}]  }
   0x1   :  { %12 = vsyncpa [#allocation3 + $0x1], 0 }
   0x2   :  { %13 = vsyncpa [#allocation4], 0 }
   0x3   :  { %15 = vsyncpa [#allocation4 + $0x1], 0  ;;  %s855_s18 = smov 0   ;;  %s857_s19 = smov 0  }
   0x4   :  { %s859_s20 = smov 0   ;;  %s861_s21 = smov 0  }
   0x5 LB: > { %s876_s22 = sadd.s32 4294967295, %s821_s21   ;;  %s601_s23 = sadd.s32 4294967294, %s821_s21   ;;  %s821_s21 = sphi %s861_s21, %s1028_s21   ;;  %s817_s20 = sphi %s859_s20, %s1027_s20   ;;  %s813_s19 = sphi %s857_s19, %s1026_s19   ;;  %s809_s18 = sphi %s855_s18, %s1025_s18  }
   0x6   : > { %s880_s24 = sadd.s32 1, %s821_s21   ;;  %s28_s25 = sadd.s32 1, %s817_s20 }
   0x7   : > { %s25_s26 = ssub.s32 %s821_s21, %s880_s24  ;;  %p35_p0 = scmp.ne.s32.totalorder %s817_s20, %s813_s19 }
   0x8   : > { %p26_p1 = scmp.eq.s32.totalorder %s25_s26, 0  ;;  %p36_p2 = scmp.eq.s32.totalorder %s821_s21, 0 }
   0x9   : > { %p41_p3 = scmp.ne.s32.totalorder %s813_s19, %s809_s18  ;;  %p42_p4 = scmp.eq.s32.totalorder %s876_s22, 0 }
   0xa   : > { %s892_s27 = scalar_select %p26_p1, %s817_s20, %s28_s25  }
   0xb   : > { %p894_p5 = por %p36_p2, %p35_p0  ;;  %p898_p6 = por %p42_p4, %p41_p3 }
   0xc   : > { %p149_p7 = scmp.eq.s32.totalorder %s876_s22, 1  ;;  %p155_p8 = scmp.eq.s32.totalorder %s601_s23, 1 }
   0xd   : > { %p683_p10 = scmp.lt.s32.totalorder %s821_s21, 2  ;;  %s187_s7 = sand.u32 1, %s817_s20  }
   0xe   : > { %p905_p11 = por %p149_p7, %p35_p0  ;;  %p909_p12 = por %p155_p8, %p41_p3 }
   0xf   : > { %s655_s8 = sshll.u32 %s821_s21, 5  ;;  %s604_s9 = sshll.u32 %s187_s7, 5 }
  0x10   : > { %s196_s12 = scalar_lea.hbm %s1013_s0, %s655_s8  ;;  %s191_s14 = scalar_lea.vmem [#allocation2], %s604_s9 }
  0x11   : > { %s197_s13 = sshll.u32 %s196_s12, 4  ;;  %s199_s15 = sshll.u32 %s191_s14, 4  ;;  %s198_s13 = int_to_ptr.hbm [resolvable:$true] %s197_s13  ;;  %s200_s15 = int_to_ptr.vmem [resolvable:$true] %s199_s15 }
  0x12   : > { %p920_p13 = pnand %p683_p10, %p894_p5  ;;  %p607_p0 = scmp.ge.s32.totalorder %s821_s21, 1 }
  0x13   : > { %p207_p1 = scmp.lt.s32.totalorder %s821_s21, 3  ;;  %s188_s17 = scalar_lea.sflag [#allocation3], %s187_s7 }
  0x14   : > { %s725_s23 = sshra.s32 %s198_s13, 4  ;;  %p729_p3 = pneg %p920_p13  ;;  %s726_s23 = int_to_ptr.hbm [resolvable:$true] %s725_s23 }
  0x15   : > { %s727_s25 = scalar_lea.hbm %s726_s23, 32  ;;  %s732_s28 = scalar_lea.hbm %s1013_s0, 64 }
  0x16   : > { %p728_p2 = scmp.ne.s32.totalorder %s726_s23, %s727_s25  ;;  %p733_p5 = scmp.lt.s32.totalorder %s726_s23, %s1013_s0 }
  0x17   : > { %p734_p8 = scmp.lt.s32.totalorder %s732_s28, %s727_s25 }
  0x18   : > { %p730_p4 = pnand %p729_p3, %p728_p2 }
  0x19   : > { %p735_p10 = por %p734_p8, %p733_p5 }
  0x1a   : > { %p731_p7 = pneg %p730_p4 }
  0x1c   : > { %p736_p9 = pnand %p735_p10, %p731_p7 }
  0x1e   : > { %739 = shalt.err (!%p736_p9)
}
  0x1f   : > { %s823_s7 = smov 64   ;;  %s824_s11 = smov 4  }
  0x20   : > { %678 = dma.hbm_to_vmem [thread:$0]  (!%p920_p13), %s198_s13, 512, %s200_s15, %s188_s17, %s823_s7, %s823_s7, %s824_s11  }
  0x21   : > { %p208_p2 = pnand %p607_p0, %p207_p1 }
  0x22   : > { %s941_s12 = sand.u32 (!%p208_p2), 1, %s813_s19  }
  0x23   : > { %211 = sbr.rel (%p208_p2) target bundleno = 627 (0x273), region = 40  ;;  %s608_s14 = sshll.u32 (!%p208_p2), %s941_s12, 5 }
  0x24   : > { %s214_s23 = scalar_lea.sflag (!%p208_p2), [#allocation3], %s941_s12  ;;  %s217_s25 = scalar_lea.vmem (!%p208_p2), [#allocation2], %s608_s14 }
  0x28   : > { %800 = dma.done.wait (%p898_p6), %s214_s23, 512  }
  0x29   : > { %802 = vsyncadd (%p898_p6), %s214_s23, 4294966784  ;;  %v662_v0 = vld [vmem:[%s1014_s1 + $0x10] sm:$0xff]  ;;  %v661_v1 = vld [vmem:[%s1014_s1 + $0x8] sm:$0xff]  ;;  %vm299_vm0 = vcmask 392192   ;;  %vm341_vm1 = vcmask 261120   ;;  %vm443_vm2 = vcmask 1041409  }
  0x2a   : > { %317 = vmatpush.bf16.msra.mxu0 %v662_v0  ;;  %665 = vmatpush.bf16.msra.mxu2 %v662_v0  ;;  %v660_v2 = vld [vmem:[%s1014_s1] sm:$0xff]  ;;  %v657_v4 = vld [vmem:[%s217_s25 + $0x8] sm:$0xff]  ;;  %v658_v5 = vld [vmem:[%s217_s25 + $0x10] sm:$0xff]  ;;  %vm446_vm3 = vcmask 1042434   ;;  %vm449_vm4 = vcmask 1043459   ;;  %vm452_vm5 = vcmask 1044484  }
  0x2b   : > { %666 = vmatpush.bf16.msra.mxu3 %v662_v0  ;;  %v656_v3 = vld [vmem:[%s217_s25] sm:$0xff]  ;;  %v659_v6 = vld [vmem:[%s217_s25 + $0x18] sm:$0xff]  ;;  %v664_v34 = vld [vmem:[%s1016_s3 + $0x8] sm:$0xff]  ;;  %vm455_vm6 = vcmask 1045509   ;;  %vm458_vm7 = vcmask 1046534   ;;  %vm461_vm8 = vcmask 1047559  }
  0x2c   : > { %485 = vmatpush.bf16.msra.mxu1 %v664_v34  ;;  %v663_v40 = vld [vmem:[%s1016_s3] sm:$0xff]  ;;  %s609_s25 = sshll.u32 %s941_s12, 3  ;;  %s652_s16 = sshll.u32 %s876_s22, 3 }
  0x2d   : > { %v719_v45 = vld [vmem:[%s1015_s2] ss:$0 sm:$0xff]  ;;  %s526_s17 = scalar_lea.hbm %s1018_s5, %s652_s16  ;;  %s244_s26 = scalar_lea.vmem [#allocation5], %s609_s25 }
  0x2e   : > { %318 = vmatpush.bf16.msra.mxu0 %v661_v1  ;;  %667 = vmatpush.bf16.msra.mxu2 %v661_v1  ;;  %s528_s8 = sshll.u32 %s244_s26, 4  ;;  %s530_s29 = sshll.u32 %s526_s17, 4  ;;  %s529_s8 = int_to_ptr.vmem [resolvable:$true] %s528_s8  ;;  %s531_s29 = int_to_ptr.hbm [resolvable:$true] %s530_s29 }
  0x2f   : > { %668 = vmatpush.bf16.msra.mxu3 %v661_v1  ;;  %s516_s22 = scalar_lea.sflag [#allocation4], %s941_s12  ;;  %s769_s28 = sshra.s32 %s531_s29, 4  ;;  %s770_s28 = int_to_ptr.hbm [resolvable:$true] %s769_s28 }
  0x30   : > { %486 = vmatpush.bf16.msra.mxu1 %v663_v40  ;;  %s771_s9 = scalar_lea.hbm %s770_s28, 8  ;;  %s775_s11 = scalar_lea.hbm %s1018_s5, 16 }
  0x31   : > { %p772_p6 = scmp.ne.s32.totalorder %s770_s28, %s771_s9  ;;  %p776_p0 = scmp.lt.s32.totalorder %s770_s28, %s1018_s5 }
  0x32   : > { %319 = vmatpush.bf16.msra.mxu0 %v660_v2  ;;  %669 = vmatpush.bf16.msra.mxu2 %v660_v2  ;;  %p777_p1 = scmp.lt.s32.totalorder %s775_s11, %s771_s9 }
  0x33   : > { %670 = vmatpush.bf16.msra.mxu3 %v660_v2  ;;  %p773_p9 = pnand %p772_p6, %p905_p11 }
  0x34   : > { %p778_p3 = por %p777_p1, %p776_p0 }
  0x35   : > { %638 = vmatmul.msk.bf16.vlgmr.msra.gmra.mxu0 %vm299_vm0, %v656_v3  ;;  %639 = vmatmul.msk.bf16.vlgmr.msra.gmra.mxu2 %vm299_vm0, %v657_v4  ;;  %p774_p13 = pneg %p773_p9 }
  0x36   : > { %640 = vmatmul.msk.bf16.vlgmr.msra.gmra.mxu3 %vm299_vm0, %v658_v5 }
  0x37   : > { %p779_p4 = pnand %p778_p3, %p774_p13 }
  0x46   : > { %641 = vmatmul.msk.bf16.gmra.mxu3 %vm299_vm0, %v659_v6 }
  0xb2   : > { %v321_v7 = vpop.f32.mrf.mxu0 }
  0xb3   : > { %v342_v8 = vsel %vm341_vm1, %v321_v7, -inf }
  0xb4   : > { %v343_v9 = vrot.slane %v342_v8, 4 }
  0xb6   : > { %v344_v11 = vmax.f32 %v342_v8, %v343_v9 }
  0xb8   : > { %v326_v10 = vpop.f32.mrf.mxu2  ;;  %v345_v21 = vrot.slane %v344_v11, 2 }
  0xb9   : > { %v356_v12 = vsel %vm341_vm1, %v326_v10, -inf  ;;  %v331_v13 = vpop.f32.mrf.mxu3 }
  0xba   : > { %v357_v14 = vrot.slane %v356_v12, 4  ;;  %v370_v15 = vsel %vm341_vm1, %v331_v13, -inf  ;;  %v323_v16 = vpop.f32.mrf.mxu0  ;;  %v346_v27 = vmax.f32 %v344_v11, %v345_v21 }
  0xbb   : > { %v349_v17 = vsel %vm341_vm1, %v323_v16, -inf  ;;  %v371_v19 = vrot.slane %v370_v15, 4 }
  0xbc   : > { %v358_v18 = vmax.f32 %v356_v12, %v357_v14  ;;  %v350_v20 = vrot.slane %v349_v17, 4  ;;  %v347_v38 = vrot.slane %v346_v27, 1 }
  0xbd   : > { %v372_v24 = vmax.f32 %v370_v15, %v371_v19 }
  0xbe   : > { %v359_v22 = vrot.slane %v358_v18, 2  ;;  %v351_v23 = vmax.f32 %v349_v17, %v350_v20  ;;  %v348_v48 = vmax.f32 %v346_v27, %v347_v38 }
  0xbf   : > { %v373_v35 = vrot.slane %v372_v24, 2 }
  0xc0   : > { %v352_v25 = vrot.slane %v351_v23, 2  ;;  %v328_v26 = vpop.f32.mrf.mxu2  ;;  %v360_v30 = vmax.f32 %v358_v18, %v359_v22  ;;  %v402_v60 = vadd.f32 %v719_v45, %v348_v48 }
  0xc1   : > { %v363_v28 = vsel %vm341_vm1, %v328_v26, -inf  ;;  %v333_v29 = vpop.f32.mrf.mxu3  ;;  %v374_v46 = vmax.f32 %v372_v24, %v373_v35 }
  0xc2   : > { %v353_v31 = vmax.f32 %v351_v23, %v352_v25  ;;  %v364_v32 = vrot.slane %v363_v28, 4  ;;  %v377_v33 = vsel %vm341_vm1, %v333_v29, -inf  ;;  %v361_v41 = vrot.slane %v360_v30, 1 }
  0xc3   : > { %v378_v39 = vrot.slane %v377_v33, 4  ;;  %v375_v57 = vrot.slane %v374_v46, 1  ;;  %v410_v5 = vpack.c.bf16 %v402_v60, %v402_v60 }
  0xc4   : > { %v354_v36 = vrot.slane %v353_v31, 1  ;;  %v365_v37 = vmax.f32 %v363_v28, %v364_v32  ;;  %v362_v51 = vmax.f32 %v360_v30, %v361_v41 }
  0xc5   : > { %v379_v44 = vmax.f32 %v377_v33, %v378_v39  ;;  %v376_v2 = vmax.f32 %v374_v46, %v375_v57  ;;  %v434_v16 = vunpack.c.l.b16 %v410_v5 }
  0xc6   : > { %v355_v42 = vmax.f32 %v353_v31, %v354_v36  ;;  %v366_v43 = vrot.slane %v365_v37, 2  ;;  %v404_v61 = vadd.f32 %v719_v45, %v362_v51 }
  0xc7   : > { %v380_v49 = vrot.slane %v379_v44, 2  ;;  %v406_v13 = vadd.f32 %v719_v45, %v376_v2 }
  0xc8   : > { %v367_v47 = vmax.f32 %v365_v37, %v366_v43  ;;  %v403_v52 = vadd.f32 %v719_v45, %v355_v42  ;;  %v412_v6 = vpack.c.bf16 %v404_v61, %v404_v61 }
  0xc9   : > { %v336_v50 = vpop.f32.mrf.mxu3  ;;  %v381_v55 = vmax.f32 %v379_v44, %v380_v49  ;;  %v414_v23 = vpack.c.bf16 %v406_v13, %v406_v13 }
  0xca   : > { %v368_v53 = vrot.slane %v367_v47, 1  ;;  %v384_v54 = vsel %vm341_vm1, %v336_v50, -inf  ;;  %v411_v62 = vpack.c.bf16 %v403_v52, %v403_v52  ;;  %v436_v17 = vunpack.c.l.b16 %v412_v6 }
  0xcb   : > { %v385_v56 = vrot.slane %v384_v54, 4  ;;  %v382_v0 = vrot.slane %v381_v55, 1  ;;  %v438_v31 = vunpack.c.l.b16 %v414_v23 }
  0xcc   : > { %v369_v58 = vmax.f32 %v367_v47, %v368_v53  ;;  %v435_v7 = vunpack.c.l.b16 %v411_v62  ;;  %v445_v25 = vrot.slane %v436_v17, 6 }
  0xcd   : > { %v386_v59 = vmax.f32 %v384_v54, %v385_v56  ;;  %v383_v10 = vmax.f32 %v381_v55, %v382_v0  ;;  %v451_v38 = vrot.slane %v438_v31, 4 }
  0xce   : > { %v405_v63 = vadd.f32 %v719_v45, %v369_v58  ;;  %v442_v18 = vrot.slane %v435_v7, 7 }
  0xcf   : > { %v387_v1 = vrot.slane %v386_v59, 2  ;;  %v407_v20 = vadd.f32 %v719_v45, %v383_v10 }
  0xd0   : > { %v413_v9 = vpack.c.bf16 %v405_v63, %v405_v63  ;;  %v444_v27 = vsel %vm443_vm2, %v442_v18, %v434_v16 }
  0xd1   : > { %v388_v3 = vmax.f32 %v386_v59, %v387_v1  ;;  %v338_v4 = vpop.f32.mrf.mxu3  ;;  %v415_v29 = vpack.c.bf16 %v407_v20, %v407_v20  ;;  %v447_v34 = vsel %vm446_vm3, %v445_v25, %v444_v27 }
  0xd2   : > { %v391_v8 = vsel %vm341_vm1, %v338_v4, -inf  ;;  %v437_v19 = vunpack.c.l.b16 %v413_v9 }
  0xd3   : > { %v389_v11 = vrot.slane %v388_v3, 1  ;;  %v392_v12 = vrot.slane %v391_v8, 4  ;;  %v439_v35 = vunpack.c.l.b16 %v415_v29 }
  0xd4   : > { %v448_v28 = vrot.slane %v437_v19, 5 }
  0xd5   : > { %v390_v14 = vmax.f32 %v388_v3, %v389_v11  ;;  %v393_v15 = vmax.f32 %v391_v8, %v392_v12  ;;  %v454_v42 = vrot.slane %v439_v35, 3 }
  0xd6   : > { %v450_v37 = vsel %vm449_vm4, %v448_v28, %v447_v34 }
  0xd7   : > { %v408_v21 = vadd.f32 %v719_v45, %v390_v14  ;;  %v394_v22 = vrot.slane %v393_v15, 2  ;;  %v453_v41 = vsel %vm452_vm5, %v451_v38, %v450_v37 }
  0xd8   : > { %v456_v44 = vsel %vm455_vm6, %v454_v42, %v453_v41 }
  0xd9   : > { %v395_v24 = vmax.f32 %v393_v15, %v394_v22  ;;  %v416_v26 = vpack.c.bf16 %v408_v21, %v408_v21 }
  0xdb   : > { %v396_v30 = vrot.slane %v395_v24, 1  ;;  %v440_v33 = vunpack.c.l.b16 %v416_v26 }
  0xdd   : > { %v397_v32 = vmax.f32 %v395_v24, %v396_v30  ;;  %v457_v40 = vrot.slane %v440_v33, 2 }
  0xdf   : > { %v409_v36 = vadd.f32 %v719_v45, %v397_v32  ;;  %v459_v47 = vsel %vm458_vm7, %v457_v40, %v456_v44  ;;  %v720_v45 = vld [vmem:[%s1017_s4] ss:$0 sm:$0xff] }
  0xe1   : > { %v417_v39 = vpack.c.bf16 %v409_v36, %v409_v36 }
  0xe3   : > { %v441_v43 = vunpack.c.l.b16 %v417_v39 }
  0xe5   : > { %v460_v46 = vrot.slane %v441_v43, 1 }
  0xe7   : > { %v462_v48 = vsel %vm461_vm8, %v460_v46, %v459_v47 }
  0xe8   : > { %v463_v49 = vpack.c.b16 %v462_v48, %v462_v48 }
  0xea   : > { %650 = vmatmul.msk.bf16.vlgmr.msra.gmra.mxu1 %vm341_vm1, %v463_v49 }
 0x167   : > { %v488_v50 = vpop.f32.mrf.mxu1 }
 0x168   : > { %v489_v51 = vadd.f32 %v720_v45, %v488_v50 }
 0x16a   : > { %492 = vmax.xlane.f32.xlu0 %v489_v51 }
 0x16f   : > { %v490_v52 = vpop.f32.mrf.mxu1 }
 0x1dd   : > { %v493_v53 = vpop.xlane.xlu0 %492 }
 0x1de   : > { %v494_v54 = vsub.f32 %v489_v51, %v493_v53 }
 0x1e0   : > { %v495_v55 = vmul.f32 1.442695, %v494_v54 }
 0x1e2   : > { %721 = vpow2.f32 %v495_v55 }
 0x1e8   : > { %v722_v56 = vpop.eup %721 }
 0x1e9   : > { %497 = vadd.xlane.f32.xlu0 %v722_v56 }
 0x25c   : > { %v498_v57 = vpop.xlane.xlu0 %497 }
 0x25d   : > { %723 = vrcp.f32 %v498_v57  ;;  %v510_v61 = vand.u32 2147483648, %v498_v57  ;;  %v508_v63 = vand.u32 2147483647, %v498_v57  ;;  %vm504_vm10 = vweird.f32 %v498_v57 }
 0x25f   : > { %v511_v1 = vor.u32 1.1754944e-38, %v510_v61  ;;  %vm509_vm12 = vcmp.eq.f32.partialorder %v508_v63, 8.507059e+37 }
 0x263   : > { %v724_v58 = vpop.eup %723 }
 0x264   : > { %v500_v59 = vmul.f32 %v724_v58, %v498_v57  ;;  %vm505_vm9 = vweird.f32 %v724_v58 }
 0x265   : > { %vm506_vm11 = vmor %vm504_vm10, %vm505_vm9 }
 0x266   : > { %v501_v60 = vsub.f32 1.0, %v500_v59 }
 0x268   : > { %v502_v62 = vmul.f32 %v724_v58, %v501_v60 }
 0x26a   : > { %v503_v0 = vadd.f32 %v724_v58, %v502_v62 }
 0x26c   : > { %v507_v2 = vsel %vm506_vm11, %v724_v58, %v503_v0 }
 0x26d   : > { %v512_v3 = vsel %vm509_vm12, %v511_v1, %v507_v2 }
 0x26e   : > { %v513_v4 = vmul.f32 %v722_v56, %v512_v3 }
 0x270   : > { %514 = vst [vmem:[%s244_s26] sm:$0xff] %v513_v4 }
 0x271   : > { %782 = shalt.err (!%p779_p4)
}
 0x272   : > { %673 = dma.vmem_to_hbm [thread:$0]  (%p905_p11), %s529_s8, 128, %s531_s29, %s516_s22  }
 0x273 PF: > { %s542_s12 = sand.u32 1, %s809_s18   ;;  %p1024_p7 = scmp.ge.s32.totalorder %s821_s21, 2 }
 0x274   : > { %s543_s25 = scalar_lea.sflag [#allocation4], %s542_s12 }
 0x275   : > { %p680_p5 = pnand %p1024_p7, %p909_p12 }
 0x277   : > { %p681_p8 = pneg %p680_p5 }
 0x279   : > { %804 = dma.done.wait (%p681_p8), %s543_s25, 128  }
 0x27a   : > { %806 = vsyncadd (%p681_p8), %s543_s25, 4294967168  ;;  %p18_p10 = scmp.ge.s32.totalorder %s880_s24, 4   ;;  %s1025_s18 = smov %s813_s19 }
 0x27b   : > { %s1026_s19 = smov %s817_s20  ;;  %s1027_s20 = smov %s892_s27 }
 0x27c   : > { %s1028_s21 = smov %s880_s24  ;;  %20 = sbr.rel (!%p18_p10) target bundleno = 5 (0x5), region = 85 }
 0x281   :  { %549 = vsyncpa [#allocation3], 1 }
 0x282   :  { %551 = vsyncpa [#allocation3 + $0x1], 1 }
 0x283   :  { %552 = vsyncpa [#allocation4], 1 }
 0x284   :  { %554 = vsyncpa [#allocation4 + $0x1], 1 }

</bundles_post_ra>
